<compile_context>
chip_gen: v6e
topology: v6e:2x2x1
jax: 0.10.0
libtpu: 0.0.40
codegen_flags: <defaults>
</compile_context>

<pallas_src>
import functools

import jax
import jax.numpy as jnp
from jax.experimental import pallas as pl
from jax.experimental.pallas import tpu as pltpu


def _round_up(x, m):
    return ((x + m - 1) // m) * m


def _cdiv(a, b):
    return (a + b - 1) // b


def _vmem_cap_bytes():
    """Generation-aware VMEM budget with ~25% headroom for compiler scratch."""
    try:
        phys = int(pltpu.get_tpu_info().vmem_capacity_bytes)
    except Exception:
        phys = 64 * 1024 * 1024  # conservative (v7x per-TC size); ok on v5e/v6e
    return int(phys * 0.75)


_VMEM_CAP = _vmem_cap_bytes()


def _choose_block_m(B):
    """Batch tile: single step for small B, 256-512 row tiles for large B."""
    bm8 = _round_up(B, 8)
    if bm8 <= 512:
        return bm8                      # one grid step, no splitting overhead
    n_tiles = _cdiv(bm8, 512)           # keep every tile in [256, 512] rows
    return _round_up(_cdiv(bm8, n_tiles), 8)


def mlp_kernel(x_ref, w1_ref, b1_ref, w2_ref, b2_ref, w3_ref, b3_ref, o_ref):
    cdt = w1_ref.dtype  # MXU compute dtype (bf16 by default, f32 optional)

    # Layer 1: Linear + ReLU   (dropout == identity in eval mode)
    h = jnp.dot(x_ref[...].astype(cdt), w1_ref[...],
                preferred_element_type=jnp.float32)
    h = jnp.maximum(h + b1_ref[...], 0.0)          # f32 VPU (free under MXU/DMA)

    # Layer 2: Linear + ReLU   (dropout == identity in eval mode)
    h = jnp.dot(h.astype(cdt), w2_ref[...],
                preferred_element_type=jnp.float32)
    h = jnp.maximum(h + b2_ref[...], 0.0)

    # Layer 3: Linear (logits)
    out = jnp.dot(h.astype(cdt), w3_ref[...],
                  preferred_element_type=jnp.float32)
    o_ref[...] = (out + b3_ref[...]).astype(o_ref.dtype)


@functools.partial(jax.jit, static_argnames=("block_m", "compute_dtype"))
def mlp_forward(x, w1, b1, w2, b2, w3, b3, *, block_m=None,
                compute_dtype=jnp.bfloat16):
    """x: [B, input_size] float32 -> [B, num_classes] float32 logits."""
    B, in_f = x.shape
    hid = w1.shape[1]
    ncls = w3.shape[1]

    # Lane-dense (128-multiple) feature dims; 8-aligned, remainder-safe batch.
    in_p = _round_up(in_f, 128)
    hid_p = _round_up(hid, 128)
    cls_p = _round_up(ncls, 128)
    if block_m is None:
        block_m = _choose_block_m(B)
    B_p = _round_up(B, block_m)

    def pad2(a, rows, cols):
        return jnp.pad(a, ((0, rows - a.shape[0]), (0, cols - a.shape[1])))

    # Zero padding is math-preserving: padded input cols / weight rows-cols /
    # bias entries only ever produce zeros through the ReLU chain, and padded
    # output columns / batch rows are sliced off below.
    xp = pad2(x, B_p, in_p).astype(compute_dtype)       # halved x DMA in bf16
    w1p = pad2(w1, in_p, hid_p).astype(compute_dtype)
    w2p = pad2(w2, hid_p, hid_p).astype(compute_dtype)
    w3p = pad2(w3, hid_p, cls_p).astype(compute_dtype)
    b1p = pad2(b1, 1, hid_p).astype(jnp.float32)
    b2p = pad2(b2, 1, hid_p).astype(jnp.float32)
    b3p = pad2(b3, 1, cls_p).astype(jnp.float32)

    grid = (B_p // block_m,)

    # --- VMEM budget (single-buffered weights/biases, double-buffered x/out) --
    w_item = jnp.dtype(compute_dtype).itemsize
    weight_bytes = (in_p * hid_p + hid_p * hid_p + hid_p * cls_p) * w_item
    bias_bytes = (2 * hid_p + cls_p) * 4
    vmem_bytes = (
        2 * block_m * in_p * w_item        # x tiles (double-buffered, cdt)
        + 2 * block_m * cls_p * 4          # out tiles (double-buffered, f32)
        + weight_bytes + bias_bytes        # grid-invariant, Buffered(1)
        + 4 * block_m * hid_p * 4          # f32 intermediates headroom
    )
    if vmem_bytes > _VMEM_CAP:
        # TODO(synk): K-tiled variant (grid axis over hidden, "arbitrary", VMEM
        # f32 accumulator + pl.when init/finalize) for very large hidden sizes.
        raise NotImplementedError(
            f"Resident-weight MLP kernel needs ~{vmem_bytes} B VMEM "
            f"(> budget {_VMEM_CAP} B); K-tiled path not implemented yet.")
    vmem_limit = int(min(_VMEM_CAP,
                         max(int(vmem_bytes * 1.3), 4 * 1024 * 1024)))

    # --- Cost estimate hint for XLA's scheduler ------------------------------
    flops = 2 * B_p * (in_p * hid_p + hid_p * hid_p + hid_p * cls_p)
    bytes_accessed = (
        xp.size * w_item
        + weight_bytes + bias_bytes
        + B_p * cls_p * 4
    )

    # Grid-invariant blocks: single-buffered (they never change across steps).
    def invariant(shape):
        return pl.BlockSpec(shape, lambda i: (0, 0),
                            pipeline_mode=pl.Buffered(1))

    out_p = pl.pallas_call(
        mlp_kernel,
        out_shape=jax.ShapeDtypeStruct((B_p, cls_p), jnp.float32),
        grid_spec=pltpu.PrefetchScalarGridSpec(
            num_scalar_prefetch=0,
            grid=grid,
            in_specs=[
                pl.BlockSpec((block_m, in_p), lambda i: (i, 0)),  # x (batch-tiled)
                invariant(w1p.shape), invariant(b1p.shape),
                invariant(w2p.shape), invariant(b2p.shape),
                invariant(w3p.shape), invariant(b3p.shape),
            ],
            out_specs=pl.BlockSpec((block_m, cls_p), lambda i: (i, 0)),
        ),
        compiler_params=pltpu.CompilerParams(
            dimension_semantics=("parallel",),
            vmem_limit_bytes=vmem_limit,
        ),
        cost_estimate=pl.CostEstimate(
            flops=flops, transcendentals=0, bytes_accessed=bytes_accessed),
    )(xp, w1p, b1p, w2p, b2p, w3p, b3p)

    # Slice away batch / class padding (fused under jit).
    return out_p[:B, :ncls]


def init_params(key, input_size, hidden_size, num_classes):
    """Deterministic init mimicking nn.Linear's uniform(-1/sqrt(fan_in), +)."""
    ks = jax.random.split(key, 6)

    def linear(kw, kb, fan_in, fan_out):
        bound = 1.0 / jnp.sqrt(fan_in)
        w = jax.random.uniform(kw, (fan_in, fan_out), jnp.float32, -bound, bound)
        b = jax.random.uniform(kb, (1, fan_out), jnp.float32, -bound, bound)
        return w, b

    w1, b1 = linear(ks[0], ks[1], input_size, hidden_size)
    w2, b2 = linear(ks[2], ks[3], hidden_size, hidden_size)
    w3, b3 = linear(ks[4], ks[5], hidden_size, num_classes)
    return w1, b1, w2, b2, w3, b3


if __name__ == "__main__":
    # Small shapes consistent with the module's forward: x is [batch, input_size].
    # batch=10 deliberately not a multiple of 8 to exercise remainder padding;
    # with the new policy this runs as a single 16-row grid step.
    batch, input_size, hidden_size, num_classes = 10, 32, 64, 16

    key = jax.random.PRNGKey(0)
    k_x, k_p = jax.random.split(key)
    x = jax.random.normal(k_x, (batch, input_size), dtype=jnp.float32)
    params = init_params(k_p, input_size, hidden_size, num_classes)
    w1, b1, w2, b2, w3, b3 = params

    # Pure-JAX reference (eval-mode dropout == identity).
    ref = jnp.maximum(x @ w1 + b1, 0.0)
    ref = jnp.maximum(ref @ w2 + b2, 0.0)
    ref = ref @ w3 + b3

    # f32 path (bit-faithful to the torch module's eval forward).
    out_f32 = jax.block_until_ready(
        mlp_forward(x, *params, compute_dtype=jnp.float32))
    assert out_f32.shape == (batch, num_classes)
    assert jnp.allclose(out_f32, ref, atol=1e-5, rtol=1e-5)

    # Default bf16 compute path (MXU full-rate on v5e/v6e/v7x), f32 accumulation.
    # Note: layer-1/2 outputs are re-cast to bf16 before the next matmul, adding
    # two rounding steps vs the f32 torch reference -> loose tolerance.
    out_bf16 = jax.block_until_ready(mlp_forward(x, *params))
    assert out_bf16.shape == (batch, num_classes)
    assert jnp.allclose(out_bf16, ref, atol=1.5e-1, rtol=1.5e-1)

    print("KERNEL_OK")
</pallas_src>

<mosaic_0001>
module attributes {stable_mosaic.version = 11 : i64} {
  func.func @mlp_kernel(%arg0: i32, %arg1: memref<16x128xf32, #tpu.memory_space<vmem>>, %arg2: memref<128x128xf32, #tpu.memory_space<vmem>>, %arg3: memref<1x128xf32, #tpu.memory_space<vmem>>, %arg4: memref<128x128xf32, #tpu.memory_space<vmem>>, %arg5: memref<1x128xf32, #tpu.memory_space<vmem>>, %arg6: memref<128x128xf32, #tpu.memory_space<vmem>>, %arg7: memref<1x128xf32, #tpu.memory_space<vmem>>, %arg8: memref<16x128xf32, #tpu.memory_space<vmem>>) attributes {dimension_semantics = [#tpu.dimension_semantics<parallel>], iteration_bounds = array<i64: 1>, scalar_prefetch = 0 : i64, scratch_operands = 0 : i64, tpu.core_type = #tpu.core_type<tc>, window_params = [{transform_indices = @transform_0, window_bounds = array<i64: 16, 128>}, {pipeline_mode = #tpu.pipeline_mode<synchronous>, transform_indices = @transform_1, window_bounds = array<i64: 128, 128>}, {pipeline_mode = #tpu.pipeline_mode<synchronous>, transform_indices = @transform_2, window_bounds = array<i64: 1, 128>}, {pipeline_mode = #tpu.pipeline_mode<synchronous>, transform_indices = @transform_3, window_bounds = array<i64: 128, 128>}, {pipeline_mode = #tpu.pipeline_mode<synchronous>, transform_indices = @transform_4, window_bounds = array<i64: 1, 128>}, {pipeline_mode = #tpu.pipeline_mode<synchronous>, transform_indices = @transform_5, window_bounds = array<i64: 128, 128>}, {pipeline_mode = #tpu.pipeline_mode<synchronous>, transform_indices = @transform_6, window_bounds = array<i64: 1, 128>}, {transform_indices = @transform_7, window_bounds = array<i64: 16, 128>}]} {
    %c0 = arith.constant 0 : index
    %c0_0 = arith.constant 0 : index
    %0 = vector.load %arg1[%c0, %c0_0] : memref<16x128xf32, #tpu.memory_space<vmem>>, vector<16x128xf32>
    %c0_1 = arith.constant 0 : index
    %c0_2 = arith.constant 0 : index
    %1 = vector.load %arg2[%c0_1, %c0_2] : memref<128x128xf32, #tpu.memory_space<vmem>>, vector<128x128xf32>
    %cst = arith.constant dense<0.000000e+00> : vector<16x128xf32>
    %2 = tpu.matmul %0, %1, %cst {dimension_numbers = #tpu.dot_dimension_numbers<[1], [0], [0], [1], [0, 0, 1, 1], [], []>} : vector<16x128xf32>, vector<128x128xf32>, vector<16x128xf32> -> vector<16x128xf32>
    %c0_3 = arith.constant 0 : index
    %c0_4 = arith.constant 0 : index
    %3 = vector.load %arg3[%c0_3, %c0_4] : memref<1x128xf32, #tpu.memory_space<vmem>>, vector<1x128xf32>
    %4 = vector.broadcast %3 : vector<1x128xf32> to vector<16x128xf32>
    %5 = arith.addf %2, %4 : vector<16x128xf32>
    %cst_5 = arith.constant 0.000000e+00 : f32
    %6 = vector.broadcast %cst_5 : f32 to vector<16x128xf32>
    %7 = arith.maximumf %5, %6 : vector<16x128xf32>
    %c0_6 = arith.constant 0 : index
    %c0_7 = arith.constant 0 : index
    %8 = vector.load %arg4[%c0_6, %c0_7] : memref<128x128xf32, #tpu.memory_space<vmem>>, vector<128x128xf32>
    %cst_8 = arith.constant dense<0.000000e+00> : vector<16x128xf32>
    %9 = tpu.matmul %7, %8, %cst_8 {dimension_numbers = #tpu.dot_dimension_numbers<[1], [0], [0], [1], [0, 0, 1, 1], [], []>} : vector<16x128xf32>, vector<128x128xf32>, vector<16x128xf32> -> vector<16x128xf32>
    %c0_9 = arith.constant 0 : index
    %c0_10 = arith.constant 0 : index
    %10 = vector.load %arg5[%c0_9, %c0_10] : memref<1x128xf32, #tpu.memory_space<vmem>>, vector<1x128xf32>
    %11 = vector.broadcast %10 : vector<1x128xf32> to vector<16x128xf32>
    %12 = arith.addf %9, %11 : vector<16x128xf32>
    %cst_11 = arith.constant 0.000000e+00 : f32
    %13 = vector.broadcast %cst_11 : f32 to vector<16x128xf32>
    %14 = arith.maximumf %12, %13 : vector<16x128xf32>
    %c0_12 = arith.constant 0 : index
    %c0_13 = arith.constant 0 : index
    %15 = vector.load %arg6[%c0_12, %c0_13] : memref<128x128xf32, #tpu.memory_space<vmem>>, vector<128x128xf32>
    %cst_14 = arith.constant dense<0.000000e+00> : vector<16x128xf32>
    %16 = tpu.matmul %14, %15, %cst_14 {dimension_numbers = #tpu.dot_dimension_numbers<[1], [0], [0], [1], [0, 0, 1, 1], [], []>} : vector<16x128xf32>, vector<128x128xf32>, vector<16x128xf32> -> vector<16x128xf32>
    %c0_15 = arith.constant 0 : index
    %c0_16 = arith.constant 0 : index
    %17 = vector.load %arg7[%c0_15, %c0_16] : memref<1x128xf32, #tpu.memory_space<vmem>>, vector<1x128xf32>
    %18 = vector.broadcast %17 : vector<1x128xf32> to vector<16x128xf32>
    %19 = arith.addf %16, %18 : vector<16x128xf32>
    %c0_17 = arith.constant 0 : index
    %c0_18 = arith.constant 0 : index
    %20 = vector.load %arg8[%c0_17, %c0_18] : memref<16x128xf32, #tpu.memory_space<vmem>>, vector<16x128xf32>
    tpu.vector_store %arg8[%c0_17, %c0_18], %19 {strides = array<i32>} : memref<16x128xf32, #tpu.memory_space<vmem>>, vector<16x128xf32>,
    return
  }
  func.func @transform_0(%arg0: i32) -> (i32, i32) {
    %c0_i32 = arith.constant 0 : i32
    %c0_i32_0 = arith.constant 0 : i32
    return %arg0, %c0_i32 : i32, i32
  }
  func.func @transform_1(%arg0: i32) -> (i32, i32) {
    %c0_i32 = arith.constant 0 : i32
    %c0_i32_0 = arith.constant 0 : i32
    %c0_i32_1 = arith.constant 0 : i32
    return %c0_i32, %c0_i32_0 : i32, i32
  }
  func.func @transform_2(%arg0: i32) -> (i32, i32) {
    %c0_i32 = arith.constant 0 : i32
    %c0_i32_0 = arith.constant 0 : i32
    %c0_i32_1 = arith.constant 0 : i32
    return %c0_i32, %c0_i32_0 : i32, i32
  }
  func.func @transform_3(%arg0: i32) -> (i32, i32) {
    %c0_i32 = arith.constant 0 : i32
    %c0_i32_0 = arith.constant 0 : i32
    %c0_i32_1 = arith.constant 0 : i32
    return %c0_i32, %c0_i32_0 : i32, i32
  }
  func.func @transform_4(%arg0: i32) -> (i32, i32) {
    %c0_i32 = arith.constant 0 : i32
    %c0_i32_0 = arith.constant 0 : i32
    %c0_i32_1 = arith.constant 0 : i32
    return %c0_i32, %c0_i32_0 : i32, i32
  }
  func.func @transform_5(%arg0: i32) -> (i32, i32) {
    %c0_i32 = arith.constant 0 : i32
    %c0_i32_0 = arith.constant 0 : i32
    %c0_i32_1 = arith.constant 0 : i32
    return %c0_i32, %c0_i32_0 : i32, i32
  }
  func.func @transform_6(%arg0: i32) -> (i32, i32) {
    %c0_i32 = arith.constant 0 : i32
    %c0_i32_0 = arith.constant 0 : i32
    %c0_i32_1 = arith.constant 0 : i32
    return %c0_i32, %c0_i32_0 : i32, i32
  }
  func.func @transform_7(%arg0: i32) -> (i32, i32) {
    %c0_i32 = arith.constant 0 : i32
    %c0_i32_0 = arith.constant 0 : i32
    return %arg0, %c0_i32 : i32, i32
  }
}

</mosaic_0001>

<bundles_post_ra>
// kernel: mlp_forward.1
= control target key start
LH: loop header
LB: loop body
LE: loop exit
PB: predicated region body
PF: predicated region fallthrough
CT: control target
= control target key end

     0   :  { %s737_s0 = inlined_call_operand.vmem [shape: f32[16,128], index: 0, kind: input, shape index: {}]   ;;  %s738_s1 = inlined_call_operand.vmem [shape: f32[128,128], index: 1, kind: input, shape index: {}]   ;;  %s739_s2 = inlined_call_operand.vmem [shape: f32[1,128], index: 2, kind: input, shape index: {}]   ;;  %s740_s3 = inlined_call_operand.vmem [shape: f32[128,128], index: 3, kind: input, shape index: {}]   ;;  %s741_s4 = inlined_call_operand.vmem [shape: f32[1,128], index: 4, kind: input, shape index: {}]   ;;  %s742_s5 = inlined_call_operand.vmem [shape: f32[128,128], index: 5, kind: input, shape index: {}]   ;;  %s743_s6 = inlined_call_operand.vmem [shape: f32[1,128], index: 6, kind: input, shape index: {}]   ;;  %s744_s7 = inlined_call_operand.hbm [shape: f32[16,128], index: 7, kind: output, shape index: {}]  }
   0x1   :  { %v44_v0 = vld [vmem:[%s738_s1 + $0x78] sm:$0xff]  ;;  %v43_v1 = vld [vmem:[%s738_s1 + $0x70] sm:$0xff]  ;;  %v42_v2 = vld [vmem:[%s738_s1 + $0x68] sm:$0xff] }
   0x2   :  { %402 = vmatprep.subr.mxu0 %v44_v0  ;;  %v41_v3 = vld [vmem:[%s738_s1 + $0x60] sm:$0xff]  ;;  %v40_v5 = vld [vmem:[%s738_s1 + $0x58] sm:$0xff]  ;;  %v143_v7 = vld [vmem:[%s740_s3 + $0x70] sm:$0xff] }
   0x3   :  { %403 = vmatpush3.msra.mxu0 %v44_v0  ;;  %v27_v4 = vld [vmem:[%s737_s0] sm:$0xff]  ;;  %v144_v6 = vld [vmem:[%s740_s3 + $0x78] sm:$0xff]  ;;  %v39_v8 = vld [vmem:[%s738_s1 + $0x50] sm:$0xff] }
   0x4   :  { %404 = vmatprep.subr.mxu0 %v43_v1  ;;  %434 = vmatprep.mubr.f32.mxu0 %v27_v4  ;;  %v142_v9 = vld [vmem:[%s740_s3 + $0x68] sm:$0xff]  ;;  %v141_v11 = vld [vmem:[%s740_s3 + $0x60] sm:$0xff] }
   0x5   :  { %405 = vmatpush3.msra.mxu0 %v43_v1  ;;  %437 = vmatprep.subr.mxu1 %v144_v6  ;;  %v38_v10 = vld [vmem:[%s738_s1 + $0x48] sm:$0xff] }
   0x6   :  { %406 = vmatprep.subr.mxu0 %v42_v2  ;;  %438 = vmatpush3.msra.mxu1 %v144_v6 }
   0x7   :  { %407 = vmatpush3.msra.mxu0 %v42_v2  ;;  %439 = vmatprep.subr.mxu1 %v143_v7 }
   0x8   :  { %408 = vmatprep.subr.mxu0 %v41_v3  ;;  %440 = vmatpush3.msra.mxu1 %v143_v7 }
   0x9   :  { %409 = vmatpush3.msra.mxu0 %v41_v3 }
   0xa   :  { %410 = vmatprep.subr.mxu0 %v40_v5 }
   0xb   :  { %411 = vmatpush3.msra.mxu0 %v40_v5 }
   0xc   :  { %12 = vsyncpa [#allocation3], 0  ;;  %412 = vmatprep.subr.mxu0 %v39_v8  ;;  %441 = vmatprep.subr.mxu1 %v142_v9  ;;  %v37_v12 = vld [vmem:[%s738_s1 + $0x40] sm:$0xff]  ;;  %v140_v13 = vld [vmem:[%s740_s3 + $0x58] sm:$0xff]  ;;  %s532_s8 = smov [#allocation2]  }
   0xd   :  { %413 = vmatpush3.msra.mxu0 %v39_v8  ;;  %442 = vmatpush3.msra.mxu1 %v142_v9  ;;  %v36_v14 = vld [vmem:[%s738_s1 + $0x38] sm:$0xff]  ;;  %v139_v15 = vld [vmem:[%s740_s3 + $0x50] sm:$0xff]  ;;  %v138_v17 = vld [vmem:[%s740_s3 + $0x48] sm:$0xff] }
   0xe   :  { %414 = vmatprep.subr.mxu0 %v38_v10  ;;  %443 = vmatprep.subr.mxu1 %v141_v11  ;;  %v35_v16 = vld [vmem:[%s738_s1 + $0x30] sm:$0xff]  ;;  %v34_v18 = vld [vmem:[%s738_s1 + $0x28] sm:$0xff]  ;;  %v137_v19 = vld [vmem:[%s740_s3 + $0x40] sm:$0xff] }
   0xf   :  { %415 = vmatpush3.msra.mxu0 %v38_v10  ;;  %444 = vmatpush3.msra.mxu1 %v141_v11  ;;  %v33_v20 = vld [vmem:[%s738_s1 + $0x20] sm:$0xff]  ;;  %v136_v21 = vld [vmem:[%s740_s3 + $0x38] sm:$0xff]  ;;  %v135_v23 = vld [vmem:[%s740_s3 + $0x30] sm:$0xff] }
  0x10   :  { %416 = vmatprep.subr.mxu0 %v37_v12  ;;  %445 = vmatprep.subr.mxu1 %v140_v13  ;;  %v32_v22 = vld [vmem:[%s738_s1 + $0x18] sm:$0xff]  ;;  %v31_v24 = vld [vmem:[%s738_s1 + $0x10] sm:$0xff]  ;;  %v134_v25 = vld [vmem:[%s740_s3 + $0x28] sm:$0xff] }
  0x11   :  { %417 = vmatpush3.msra.mxu0 %v37_v12  ;;  %446 = vmatpush3.msra.mxu1 %v140_v13  ;;  %v30_v26 = vld [vmem:[%s738_s1 + $0x8] sm:$0xff]  ;;  %v133_v27 = vld [vmem:[%s740_s3 + $0x20] sm:$0xff]  ;;  %v132_v30 = vld [vmem:[%s740_s3 + $0x18] sm:$0xff] }
  0x12   :  { %418 = vmatprep.subr.mxu0 %v36_v14  ;;  %447 = vmatprep.subr.mxu1 %v139_v15  ;;  %v29_v28 = vld [vmem:[%s738_s1] sm:$0xff]  ;;  %v28_v29 = vld [vmem:[%s737_s0 + $0x8] sm:$0xff]  ;;  %v131_v31 = vld [vmem:[%s740_s3 + $0x10] sm:$0xff] }
  0x13   :  { %419 = vmatpush3.msra.mxu0 %v36_v14  ;;  %448 = vmatpush3.msra.mxu1 %v139_v15  ;;  %v130_v32 = vld [vmem:[%s740_s3 + $0x8] sm:$0xff]  ;;  %v129_v33 = vld [vmem:[%s740_s3] sm:$0xff]  ;;  %v244_v34 = vld [vmem:[%s742_s5 + $0x78] sm:$0xff] }
  0x14   :  { %420 = vmatprep.subr.mxu0 %v35_v16  ;;  %449 = vmatprep.subr.mxu1 %v138_v17  ;;  %v243_v35 = vld [vmem:[%s742_s5 + $0x70] sm:$0xff]  ;;  %v242_v36 = vld [vmem:[%s742_s5 + $0x68] sm:$0xff]  ;;  %v241_v37 = vld [vmem:[%s742_s5 + $0x60] sm:$0xff] }
  0x15   :  { %421 = vmatpush3.msra.mxu0 %v35_v16  ;;  %450 = vmatpush3.msra.mxu1 %v138_v17  ;;  %v240_v38 = vld [vmem:[%s742_s5 + $0x58] sm:$0xff]  ;;  %v239_v39 = vld [vmem:[%s742_s5 + $0x50] sm:$0xff]  ;;  %v238_v40 = vld [vmem:[%s742_s5 + $0x48] sm:$0xff] }
  0x16   :  { %422 = vmatprep.subr.mxu0 %v34_v18  ;;  %451 = vmatprep.subr.mxu1 %v137_v19  ;;  %v237_v41 = vld [vmem:[%s742_s5 + $0x40] sm:$0xff]  ;;  %v236_v42 = vld [vmem:[%s742_s5 + $0x38] sm:$0xff]  ;;  %v235_v43 = vld [vmem:[%s742_s5 + $0x30] sm:$0xff] }
  0x17   :  { %423 = vmatpush3.msra.mxu0 %v34_v18  ;;  %452 = vmatpush3.msra.mxu1 %v137_v19  ;;  %v234_v44 = vld [vmem:[%s742_s5 + $0x28] sm:$0xff]  ;;  %v233_v45 = vld [vmem:[%s742_s5 + $0x20] sm:$0xff]  ;;  %v232_v53 = vld [vmem:[%s742_s5 + $0x18] sm:$0xff] }
  0x18   :  { %424 = vmatprep.subr.mxu0 %v33_v20  ;;  %453 = vmatprep.subr.mxu1 %v136_v21  ;;  %v345_v46 = vld [vmem:[%s739_s2] ss:$0 sm:$0xff]  ;;  %v231_v54 = vld [vmem:[%s742_s5 + $0x10] sm:$0xff]  ;;  %v230_v55 = vld [vmem:[%s742_s5 + $0x8] sm:$0xff] }
  0x19   :  { %425 = vmatpush3.msra.mxu0 %v33_v20  ;;  %454 = vmatpush3.msra.mxu1 %v136_v21  ;;  %v229_v56 = vld [vmem:[%s742_s5] sm:$0xff]  ;;  %s334_s5 = sshll.u32 %s532_s8, 4  ;;  %s335_s5 = int_to_ptr.vmem [resolvable:$true] %s334_s5 }
  0x1a   :  { %426 = vmatprep.subr.mxu0 %v32_v22  ;;  %455 = vmatprep.subr.mxu1 %v135_v23  ;;  %v346_v57 = vld [vmem:[%s741_s4] ss:$0 sm:$0xff]  ;;  %s510_s4 = scalar_lea.vmem %s335_s5, 256  ;;  %p515_p1 = scmp.lt.s32.totalorder %s335_s5, %s335_s5 }
  0x1b   :  { %427 = vmatpush3.msra.mxu0 %v32_v22  ;;  %456 = vmatpush3.msra.mxu1 %v135_v23  ;;  %v347_v0 = vld [vmem:[%s743_s6] ss:$0 sm:$0xff]  ;;  %p511_p0 = scmp.ne.s32.totalorder %s335_s5, %s510_s4  ;;  %p516_p2 = scmp.lt.s32.totalorder %s510_s4, %s510_s4 }
  0x1c   :  { %428 = vmatprep.subr.mxu0 %v31_v24  ;;  %457 = vmatprep.subr.mxu1 %v134_v25 }
  0x1d   :  { %429 = vmatpush3.msra.mxu0 %v31_v24  ;;  %458 = vmatpush3.msra.mxu1 %v134_v25  ;;  %p517_p3 = por %p516_p2, %p515_p1 }
  0x1e   :  { %430 = vmatprep.subr.mxu0 %v30_v26  ;;  %459 = vmatprep.subr.mxu1 %v133_v27 }
  0x1f   :  { %431 = vmatpush3.msra.mxu0 %v30_v26  ;;  %460 = vmatpush3.msra.mxu1 %v133_v27  ;;  %p518_p4 = pnand %p517_p3, %p511_p0 }
  0x20   :  { %432 = vmatprep.subr.mxu0 %v29_v28  ;;  %461 = vmatprep.subr.mxu1 %v132_v30 }
  0x21   :  { %433 = vmatpush3.msra.mxu0 %v29_v28  ;;  %462 = vmatpush3.msra.mxu1 %v132_v30 }
  0x22   :  { %435 = vmatmul.mubr.f32.vlgmr.msra.gmra.mxu0 %v28_v29  ;;  %463 = vmatprep.subr.mxu1 %v131_v31 }
  0x23   :  { %464 = vmatpush3.msra.mxu1 %v131_v31  ;;  %472 = vmatprep.subr.mxu0 %v244_v34 }
  0x24   :  { %465 = vmatprep.subr.mxu1 %v130_v32  ;;  %473 = vmatpush3.msra.mxu0 %v244_v34 }
  0x25   :  { %466 = vmatpush3.msra.mxu1 %v130_v32  ;;  %474 = vmatprep.subr.mxu0 %v243_v35 }
  0x26   :  { %467 = vmatprep.subr.mxu1 %v129_v33  ;;  %475 = vmatpush3.msra.mxu0 %v243_v35 }
  0x27   :  { %468 = vmatpush3.msra.mxu1 %v129_v33  ;;  %476 = vmatprep.subr.mxu0 %v242_v36 }
  0x28   :  { %477 = vmatpush3.msra.mxu0 %v242_v36 }
  0x29   :  { %478 = vmatprep.subr.mxu0 %v241_v37 }
  0x2a   :  { %479 = vmatpush3.msra.mxu0 %v241_v37 }
  0x2b   :  { %480 = vmatprep.subr.mxu0 %v240_v38 }
  0x2c   :  { %481 = vmatpush3.msra.mxu0 %v240_v38 }
  0x2d   :  { %482 = vmatprep.subr.mxu0 %v239_v39 }
  0x2e   :  { %483 = vmatpush3.msra.mxu0 %v239_v39 }
  0x2f   :  { %484 = vmatprep.subr.mxu0 %v238_v40 }
  0x30   :  { %485 = vmatpush3.msra.mxu0 %v238_v40 }
  0x31   :  { %486 = vmatprep.subr.mxu0 %v237_v41 }
  0x32   :  { %487 = vmatpush3.msra.mxu0 %v237_v41 }
  0x33   :  { %488 = vmatprep.subr.mxu0 %v236_v42 }
  0x34   :  { %489 = vmatpush3.msra.mxu0 %v236_v42 }
  0x35   :  { %490 = vmatprep.subr.mxu0 %v235_v43 }
  0x36   :  { %491 = vmatpush3.msra.mxu0 %v235_v43 }
  0x37   :  { %492 = vmatprep.subr.mxu0 %v234_v44 }
  0x38   :  { %493 = vmatpush3.msra.mxu0 %v234_v44 }
  0x39   :  { %494 = vmatprep.subr.mxu0 %v233_v45 }
  0x3a   :  { %495 = vmatpush3.msra.mxu0 %v233_v45 }
  0x3b   :  { %496 = vmatprep.subr.mxu0 %v232_v53 }
  0x3c   :  { %497 = vmatpush3.msra.mxu0 %v232_v53 }
  0x3d   :  { %498 = vmatprep.subr.mxu0 %v231_v54 }
  0x3e   :  { %499 = vmatpush3.msra.mxu0 %v231_v54 }
  0x3f   :  { %500 = vmatprep.subr.mxu0 %v230_v55 }
  0x40   :  { %501 = vmatpush3.msra.mxu0 %v230_v55 }
  0x41   :  { %502 = vmatprep.subr.mxu0 %v229_v56 }
  0x42   :  { %503 = vmatpush3.msra.mxu0 %v229_v56 }
  0xe2   :  { %v436_v47 = vpop.f32.mrf.mxu0 }
  0xe3   :  { %v124_v48 = vadd.f32 %v436_v47, %v345_v46 }
  0xe4   :  { %v118_v49 = vpop.f32.mrf.mxu0 }
  0xe5   :  { %v119_v50 = vadd.f32 %v345_v46, %v118_v49  ;;  %v128_v52 = vmax.f32 %v124_v48, 0.0 }
  0xe7   :  { %v127_v51 = vmax.f32 %v119_v50, 0.0 }
  0xe9   :  { %469 = vmatprep.mubr.f32.mxu1 %v127_v51 }
  0xea   :  { %470 = vmatmul.mubr.f32.vlgmr.msra.gmra.mxu1 %v128_v52 }
 0x1aa   :  { %v471_v58 = vpop.f32.mrf.mxu1 }
 0x1ab   :  { %v224_v59 = vadd.f32 %v471_v58, %v346_v57 }
 0x1ac   :  { %v218_v60 = vpop.f32.mrf.mxu1 }
 0x1ad   :  { %v219_v61 = vadd.f32 %v346_v57, %v218_v60  ;;  %v228_v63 = vmax.f32 %v224_v59, 0.0 }
 0x1af   :  { %v227_v62 = vmax.f32 %v219_v61, 0.0 }
 0x1b1   :  { %504 = vmatprep.mubr.f32.mxu0 %v227_v62 }
 0x1b2   :  { %505 = vmatmul.mubr.f32.vlgmr.msra.gmra.mxu0 %v228_v63 }
 0x272   :  { %v506_v1 = vpop.f32.mrf.mxu0 }
 0x273   :  { %v324_v2 = vadd.f32 %v506_v1, %v347_v0 }
 0x274   :  { %v318_v3 = vpop.f32.mrf.mxu0 }
 0x275   :  { %328 = vst [vmem:[#allocation2 + $0x8] sm:$0xff] %v324_v2  ;;  %v319_v4 = vadd.f32 %v347_v0, %v318_v3 }
 0x277   :  { %327 = vst [vmem:[#allocation2] sm:$0xff] %v319_v4 }
 0x278   :  { %521 = shalt.err (!%p518_p4)
}
 0x279   :  { %s533_s9 = smov 128   ;;  %s534_s10 = smov 8  }
 0x27a   :  { %340 = dma.vmem_to_hbm [thread:$0]  %s335_s5, 256, %s744_s7, [#allocation3], %s533_s9, %s533_s9, %s534_s10  }
 0x27b   :  { %530 = dma.done.wait [#allocation3], 256  }
 0x27c   :  { %531 = vsyncadd [#allocation3], 4294967040 }
 0x27d   :  { %344 = vsyncpa [#allocation3], 1 }

</bundles_post_ra>
